<compile_context>
chip_gen: v7x
topology: tpu7x:2x2x1
jax: 0.10.0
libtpu: 0.0.40
codegen_flags: <defaults>
</compile_context>

<pallas_src>
import jax
import jax.numpy as jnp
from jax import lax
from jax.experimental import pallas as pl
from jax.experimental.pallas import tpu as pltpu


def _pam_kernel(x_q_ref, x_kv_ref, qw_ref, qb_ref, kw_ref, kb_ref,
                vw_ref, vb_ref, gamma_ref, o_ref,
                q_scr, m_scr, l_scr, acc_scr):
    ki = pl.program_id(2)
    nk = pl.num_programs(2)

    @pl.when(ki == 0)
    def _init():
        # Query projection for this query block; cached (bf16) across the KV sweep.
        xq = x_q_ref[...].astype(jnp.bfloat16)                        # (C, TQ)
        q = lax.dot_general(
            qw_ref[...].astype(jnp.bfloat16), xq,
            dimension_numbers=(((1,), (0,)), ((), ())),
            preferred_element_type=jnp.float32) + qb_ref[...]         # (C8, TQ)
        q_scr[...] = q.astype(jnp.bfloat16)
        m_scr[...] = jnp.full(m_scr.shape, -jnp.inf, dtype=m_scr.dtype)
        l_scr[...] = jnp.zeros(l_scr.shape, dtype=l_scr.dtype)
        acc_scr[...] = jnp.zeros(acc_scr.shape, dtype=acc_scr.dtype)

    # Key / value projections for this KV block (1x1 conv == channel matmul).
    # NOTE: k/v are recomputed per query block; projection FLOPs are a small
    # fraction of attention FLOPs for realistic C << HW.
    xk = x_kv_ref[...].astype(jnp.bfloat16)                           # (C, TK)
    k = lax.dot_general(
        kw_ref[...].astype(jnp.bfloat16), xk,
        dimension_numbers=(((1,), (0,)), ((), ())),
        preferred_element_type=jnp.float32) + kb_ref[...]             # (C8, TK)
    v = lax.dot_general(
        vw_ref[...].astype(jnp.bfloat16), xk,
        dimension_numbers=(((1,), (0,)), ((), ())),
        preferred_element_type=jnp.float32) + vb_ref[...]             # (C, TK)

    # Transposed energy tile: s[j, i] = <k_j, q_i>  (contract the C/8 axis).
    s = lax.dot_general(
        k.astype(jnp.bfloat16), q_scr[...],
        dimension_numbers=(((0,), (0,)), ((), ())),
        preferred_element_type=jnp.float32)                           # (TK, TQ)

    # Online softmax over the KV (sublane) axis; stats are lane-oriented (1, TQ)
    # so the rescale broadcasts cleanly over the (C, TQ) accumulator.
    m_prev = m_scr[...]
    m_new = jnp.maximum(m_prev, jnp.max(s, axis=0, keepdims=True))    # (1, TQ)
    alpha = jnp.exp(m_prev - m_new)                                   # (1, TQ)
    p = jnp.exp(s - m_new)                                            # (TK, TQ)
    l_scr[...] = alpha * l_scr[...] + jnp.sum(p, axis=0, keepdims=True)
    acc_scr[...] = alpha * acc_scr[...] + lax.dot_general(
        v.astype(jnp.bfloat16), p.astype(jnp.bfloat16),
        dimension_numbers=(((1,), (0,)), ((), ())),
        preferred_element_type=jnp.float32)                           # (C, TQ)
    m_scr[...] = m_new

    @pl.when(ki == nk - 1)
    def _finalize():
        # Deferred softmax normalization via EUP reciprocal; f32 epilogue.
        inv_l = pl.reciprocal(l_scr[...], approx=True)                # (1, TQ)
        out = acc_scr[...] * inv_l                                    # (C, TQ)
        gamma = gamma_ref[0, 0]
        o_ref[...] = (gamma * out + x_q_ref[...]).astype(o_ref.dtype)


def _pick_tile(n, target):
    """Largest tile <= target that divides n, preferring multiples of 128."""
    if n <= target:
        return n
    t = (target // 128) * 128
    while t >= 128:
        if n % t == 0:
            return t
        t -= 128
    # TODO(synk): pad/mask ragged spatial sizes instead of falling back to full HW.
    return n


def pam_forward(x_nchw1, qw, qb, kw, kb, vw, vb, gamma,
                *, tq_target=256, tk_target=512):
    """PAM forward.

    x_nchw1: (B, C, H, W, 1)
    qw/kw:   (C//8, C)  1x1-conv weights (PyTorch (out, in, 1, 1) squeezed)
    vw:      (C, C)
    qb/kb:   (C//8,), vb: (C,), gamma: (1,)
    """
    x = jnp.squeeze(x_nchw1, axis=-1)
    B, C, H, W = x.shape
    HW = H * W
    C8 = qw.shape[0]

    x_flat = x.reshape(B, C, HW)          # pure reshape: no HBM transpose pass
    qb2 = qb.reshape(C8, 1).astype(jnp.float32)
    kb2 = kb.reshape(C8, 1).astype(jnp.float32)
    vb2 = vb.reshape(C, 1).astype(jnp.float32)
    gamma2 = gamma.reshape(1, 1).astype(jnp.float32)

    tq = _pick_tile(HW, tq_target)
    tk = _pick_tile(HW, tk_target)
    nq = HW // tq
    nk = HW // tk

    # Rough VMEM budget for the chosen tiles (inputs/outputs double-buffered),
    # with headroom; capped below v7x's 64 MiB physical VMEM.
    f32 = 4
    est = (2 * C * tq * f32                                   # x_q blocks
           + 2 * C * tk * f32                                 # x_kv blocks
           + 2 * C * tq * f32                                 # out blocks
           + 2 * (2 * C8 * C + C * C + 2 * C8 + 2 * C) * f32  # weights / biases
           + C8 * tq * 2 + 2 * 8 * tq * f32 + C * tq * f32    # scratch
           + (C8 + 2 * C) * tk * f32 + 2 * tk * tq * f32)     # live intermediates
    vmem_limit = int(min(max(2 * est, 32 * 1024 * 1024), 56 * 1024 * 1024))

    out_flat = pl.pallas_call(
        _pam_kernel,
        out_shape=jax.ShapeDtypeStruct((B, C, HW), x.dtype),
        grid_spec=pltpu.PrefetchScalarGridSpec(
            num_scalar_prefetch=0,
            grid=(B, nq, nk),
            in_specs=[
                pl.BlockSpec((None, C, tq), lambda b, qi, ki: (b, 0, qi)),  # x (query cols)
                pl.BlockSpec((None, C, tk), lambda b, qi, ki: (b, 0, ki)),  # x (kv cols)
                pl.BlockSpec((C8, C), lambda b, qi, ki: (0, 0)),            # query weight
                pl.BlockSpec((C8, 1), lambda b, qi, ki: (0, 0)),            # query bias
                pl.BlockSpec((C8, C), lambda b, qi, ki: (0, 0)),            # key weight
                pl.BlockSpec((C8, 1), lambda b, qi, ki: (0, 0)),            # key bias
                pl.BlockSpec((C, C), lambda b, qi, ki: (0, 0)),             # value weight
                pl.BlockSpec((C, 1), lambda b, qi, ki: (0, 0)),             # value bias
                pl.BlockSpec((1, 1), lambda b, qi, ki: (0, 0),
                             memory_space=pltpu.MemorySpace.SMEM),          # gamma
            ],
            out_specs=pl.BlockSpec((None, C, tq), lambda b, qi, ki: (b, 0, qi)),
            scratch_shapes=[
                pltpu.VMEM((C8, tq), jnp.bfloat16),   # cached query projection
                pltpu.VMEM((1, tq), jnp.float32),     # running max  m
                pltpu.VMEM((1, tq), jnp.float32),     # running sum  l
                pltpu.VMEM((C, tq), jnp.float32),     # output accumulator
            ],
        ),
        compiler_params=pltpu.CompilerParams(
            dimension_semantics=("parallel", "parallel", "arbitrary"),
            vmem_limit_bytes=vmem_limit,
        ),
    )(x_flat, x_flat, qw, qb2, kw, kb2, vw, vb2, gamma2)

    return out_flat.reshape(B, C, H, W)[..., None]


def pam_reference(x_nchw1, qw, qb, kw, kb, vw, vb, gamma):
    """Pure-JAX f32 reference mirroring the PyTorch forward."""
    x = jnp.squeeze(x_nchw1, axis=-1)
    B, C, H, W = x.shape
    HW = H * W
    xf = x.reshape(B, C, HW)                                      # (B, C, HW)
    q = jnp.einsum('oc,bcn->bon', qw, xf) + qb[None, :, None]     # (B, C8, HW)
    k = jnp.einsum('oc,bcn->bon', kw, xf) + kb[None, :, None]     # (B, C8, HW)
    v = jnp.einsum('oc,bcn->bon', vw, xf) + vb[None, :, None]     # (B, C,  HW)
    energy = jnp.einsum('bci,bcj->bij', q, k)                     # (B, HW, HW)
    att = jax.nn.softmax(energy, axis=-1)
    out = jnp.einsum('bcj,bij->bci', v, att)                      # (B, C, HW)
    out = gamma.reshape(()) * out + xf
    return out.reshape(B, C, H, W)[..., None]


if __name__ == "__main__":
    key = jax.random.PRNGKey(0)
    B, C, H, W = 2, 32, 8, 8          # in_dim = 32 -> query/key channels = 4
    C8 = C // 8

    k_x, k_qw, k_qb, k_kw, k_kb, k_vw, k_vb = jax.random.split(key, 7)

    # Input in PyTorch layout (B, C, H, W, 1).
    x = jax.random.normal(k_x, (B, C, H, W, 1), dtype=jnp.float32)

    # Conv2d(k=1) weights are (out, in, 1, 1) in PyTorch; stored squeezed (out, in).
    qw = 0.1 * jax.random.normal(k_qw, (C8, C), dtype=jnp.float32)
    qb = 0.1 * jax.random.normal(k_qb, (C8,), dtype=jnp.float32)
    kw = 0.1 * jax.random.normal(k_kw, (C8, C), dtype=jnp.float32)
    kb = 0.1 * jax.random.normal(k_kb, (C8,), dtype=jnp.float32)
    vw = 0.1 * jax.random.normal(k_vw, (C, C), dtype=jnp.float32)
    vb = 0.1 * jax.random.normal(k_vb, (C,), dtype=jnp.float32)
    # PyTorch inits gamma to 0 (output == input); use a nonzero deterministic
    # value so the attention path is actually exercised.
    gamma = jnp.full((1,), 0.5, dtype=jnp.float32)

    out = pam_forward(x, qw, qb, kw, kb, vw, vb, gamma)
    jax.block_until_ready(out)

    ref = pam_reference(x, qw, qb, kw, kb, vw, vb, gamma)
    assert out.shape == (B, C, H, W, 1)
    # bf16 MXU operands + approx reciprocal -> slightly looser tolerance vs f32 ref.
    err = float(jnp.max(jnp.abs(out - ref)))
    assert jnp.allclose(out, ref, atol=2e-2, rtol=2e-2), f"max abs err {err}"

    print("KERNEL_OK")
</pallas_src>

<mosaic_0001>
module attributes {stable_mosaic.version = 11 : i64} {
  func.func @_pam_kernel(%arg0: i32, %arg1: i32, %arg2: i32, %arg3: memref<1x32x64xf32, #tpu.memory_space<vmem>>, %arg4: memref<1x32x64xf32, #tpu.memory_space<vmem>>, %arg5: memref<4x32xf32, #tpu.memory_space<vmem>>, %arg6: memref<4x1xf32, #tpu.memory_space<vmem>>, %arg7: memref<4x32xf32, #tpu.memory_space<vmem>>, %arg8: memref<4x1xf32, #tpu.memory_space<vmem>>, %arg9: memref<32x32xf32, #tpu.memory_space<vmem>>, %arg10: memref<32x1xf32, #tpu.memory_space<vmem>>, %arg11: memref<1x1xf32, #tpu.memory_space<smem>>, %arg12: memref<1x32x64xf32, #tpu.memory_space<vmem>>, %arg13: memref<4x64xbf16, #tpu.memory_space<vmem>>, %arg14: memref<1x64xf32, #tpu.memory_space<vmem>>, %arg15: memref<1x64xf32, #tpu.memory_space<vmem>>, %arg16: memref<32x64xf32, #tpu.memory_space<vmem>>) attributes {dimension_semantics = [#tpu.dimension_semantics<parallel>, #tpu.dimension_semantics<parallel>, #tpu.dimension_semantics<arbitrary>], iteration_bounds = array<i64: 2, 1, 1>, scalar_prefetch = 0 : i64, scratch_operands = 4 : i64, tpu.core_type = #tpu.core_type<tc>, window_params = [{transform_indices = @transform_0, window_bounds = array<i64: 1, 32, 64>}, {transform_indices = @transform_1, window_bounds = array<i64: 1, 32, 64>}, {pipeline_mode = #tpu.pipeline_mode<synchronous>, transform_indices = @transform_2, window_bounds = array<i64: 4, 32>}, {pipeline_mode = #tpu.pipeline_mode<synchronous>, transform_indices = @transform_3, window_bounds = array<i64: 4, 1>}, {pipeline_mode = #tpu.pipeline_mode<synchronous>, transform_indices = @transform_4, window_bounds = array<i64: 4, 32>}, {pipeline_mode = #tpu.pipeline_mode<synchronous>, transform_indices = @transform_5, window_bounds = array<i64: 4, 1>}, {pipeline_mode = #tpu.pipeline_mode<synchronous>, transform_indices = @transform_6, window_bounds = array<i64: 32, 32>}, {pipeline_mode = #tpu.pipeline_mode<synchronous>, transform_indices = @transform_7, window_bounds = array<i64: 32, 1>}, {transform_indices = @transform_8, window_bounds = array<i64: 1, 1>}, {transform_indices = @transform_9, window_bounds = array<i64: 1, 32, 64>}]} {
    %c0_i32 = arith.constant 0 : i32
    %0 = arith.cmpi eq, %arg2, %c0_i32 : i32
    %1 = arith.extui %0 : i1 to i32
    %c0_i32_0 = arith.constant 0 : i32
    %2 = arith.cmpi ne, %1, %c0_i32_0 : i32
    scf.if %2 {
      %c0_32 = arith.constant 0 : index
      %c0_33 = arith.constant 0 : index
      %c0_34 = arith.constant 0 : index
      %48 = vector.load %arg3[%c0_32, %c0_33, %c0_34] : memref<1x32x64xf32, #tpu.memory_space<vmem>>, vector<1x32x64xf32>
      %49 = vector.shape_cast %48 : vector<1x32x64xf32> to vector<32x64xf32>
      %50 = arith.truncf %49 : vector<32x64xf32> to vector<32x64xbf16>
      %c0_35 = arith.constant 0 : index
      %c0_36 = arith.constant 0 : index
      %51 = vector.load %arg5[%c0_35, %c0_36] : memref<4x32xf32, #tpu.memory_space<vmem>>, vector<4x32xf32>
      %52 = arith.truncf %51 : vector<4x32xf32> to vector<4x32xbf16>
      %cst_37 = arith.constant dense<0.000000e+00> : vector<4x64xf32>
      %53 = tpu.matmul %52, %50, %cst_37 {dimension_numbers = #tpu.dot_dimension_numbers<[1], [0], [0], [1], [0, 0, 1, 1], [], []>} : vector<4x32xbf16>, vector<32x64xbf16>, vector<4x64xf32> -> vector<4x64xf32>
      %c0_38 = arith.constant 0 : index
      %c0_39 = arith.constant 0 : index
      %54 = vector.load %arg6[%c0_38, %c0_39] : memref<4x1xf32, #tpu.memory_space<vmem>>, vector<4x1xf32>
      %55 = vector.broadcast %54 : vector<4x1xf32> to vector<4x64xf32>
      %56 = arith.addf %53, %55 : vector<4x64xf32>
      %57 = arith.truncf %56 : vector<4x64xf32> to vector<4x64xbf16>
      %c0_40 = arith.constant 0 : index
      %c0_41 = arith.constant 0 : index
      %58 = vector.load %arg13[%c0_40, %c0_41] : memref<4x64xbf16, #tpu.memory_space<vmem>>, vector<4x64xbf16>
      tpu.vector_store %arg13[%c0_40, %c0_41], %57 {strides = array<i32>} : memref<4x64xbf16, #tpu.memory_space<vmem>>, vector<4x64xbf16>,
      %cst_42 = arith.constant 0xFF800000 : f32
      %59 = vector.broadcast %cst_42 : f32 to vector<1x64xf32>
      %c0_43 = arith.constant 0 : index
      %c0_44 = arith.constant 0 : index
      %60 = vector.load %arg14[%c0_43, %c0_44] : memref<1x64xf32, #tpu.memory_space<vmem>>, vector<1x64xf32>
      tpu.vector_store %arg14[%c0_43, %c0_44], %59 {strides = array<i32>} : memref<1x64xf32, #tpu.memory_space<vmem>>, vector<1x64xf32>,
      %cst_45 = arith.constant 0.000000e+00 : f32
      %61 = vector.broadcast %cst_45 : f32 to vector<1x64xf32>
      %c0_46 = arith.constant 0 : index
      %c0_47 = arith.constant 0 : index
      %62 = vector.load %arg15[%c0_46, %c0_47] : memref<1x64xf32, #tpu.memory_space<vmem>>, vector<1x64xf32>
      tpu.vector_store %arg15[%c0_46, %c0_47], %61 {strides = array<i32>} : memref<1x64xf32, #tpu.memory_space<vmem>>, vector<1x64xf32>,
      %cst_48 = arith.constant 0.000000e+00 : f32
      %63 = vector.broadcast %cst_48 : f32 to vector<32x64xf32>
      %c0_49 = arith.constant 0 : index
      %c0_50 = arith.constant 0 : index
      %64 = vector.load %arg16[%c0_49, %c0_50] : memref<32x64xf32, #tpu.memory_space<vmem>>, vector<32x64xf32>
      tpu.vector_store %arg16[%c0_49, %c0_50], %63 {strides = array<i32>} : memref<32x64xf32, #tpu.memory_space<vmem>>, vector<32x64xf32>,
    } else {
    }
    %c0 = arith.constant 0 : index
    %c0_1 = arith.constant 0 : index
    %c0_2 = arith.constant 0 : index
    %3 = vector.load %arg4[%c0, %c0_1, %c0_2] : memref<1x32x64xf32, #tpu.memory_space<vmem>>, vector<1x32x64xf32>
    %4 = vector.shape_cast %3 : vector<1x32x64xf32> to vector<32x64xf32>
    %5 = arith.truncf %4 : vector<32x64xf32> to vector<32x64xbf16>
    %c0_3 = arith.constant 0 : index
    %c0_4 = arith.constant 0 : index
    %6 = vector.load %arg7[%c0_3, %c0_4] : memref<4x32xf32, #tpu.memory_space<vmem>>, vector<4x32xf32>
    %7 = arith.truncf %6 : vector<4x32xf32> to vector<4x32xbf16>
    %cst = arith.constant dense<0.000000e+00> : vector<4x64xf32>
    %8 = tpu.matmul %7, %5, %cst {dimension_numbers = #tpu.dot_dimension_numbers<[1], [0], [0], [1], [0, 0, 1, 1], [], []>} : vector<4x32xbf16>, vector<32x64xbf16>, vector<4x64xf32> -> vector<4x64xf32>
    %c0_5 = arith.constant 0 : index
    %c0_6 = arith.constant 0 : index
    %9 = vector.load %arg8[%c0_5, %c0_6] : memref<4x1xf32, #tpu.memory_space<vmem>>, vector<4x1xf32>
    %10 = vector.broadcast %9 : vector<4x1xf32> to vector<4x64xf32>
    %11 = arith.addf %8, %10 : vector<4x64xf32>
    %c0_7 = arith.constant 0 : index
    %c0_8 = arith.constant 0 : index
    %12 = vector.load %arg9[%c0_7, %c0_8] : memref<32x32xf32, #tpu.memory_space<vmem>>, vector<32x32xf32>
    %13 = arith.truncf %12 : vector<32x32xf32> to vector<32x32xbf16>
    %cst_9 = arith.constant dense<0.000000e+00> : vector<32x64xf32>
    %14 = tpu.matmul %13, %5, %cst_9 {dimension_numbers = #tpu.dot_dimension_numbers<[1], [0], [0], [1], [0, 0, 1, 1], [], []>} : vector<32x32xbf16>, vector<32x64xbf16>, vector<32x64xf32> -> vector<32x64xf32>
    %c0_10 = arith.constant 0 : index
    %c0_11 = arith.constant 0 : index
    %15 = vector.load %arg10[%c0_10, %c0_11] : memref<32x1xf32, #tpu.memory_space<vmem>>, vector<32x1xf32>
    %16 = vector.broadcast %15 : vector<32x1xf32> to vector<32x64xf32>
    %17 = arith.addf %14, %16 : vector<32x64xf32>
    %18 = arith.truncf %11 : vector<4x64xf32> to vector<4x64xbf16>
    %c0_12 = arith.constant 0 : index
    %c0_13 = arith.constant 0 : index
    %19 = vector.load %arg13[%c0_12, %c0_13] : memref<4x64xbf16, #tpu.memory_space<vmem>>, vector<4x64xbf16>
    %cst_14 = arith.constant dense<0.000000e+00> : vector<64x64xf32>
    %20 = tpu.matmul %18, %19, %cst_14 {dimension_numbers = #tpu.dot_dimension_numbers<[0], [0], [1], [1], [0, 1, 1, 1], [], []>} : vector<4x64xbf16>, vector<4x64xbf16>, vector<64x64xf32> -> vector<64x64xf32>
    %c0_15 = arith.constant 0 : index
    %c0_16 = arith.constant 0 : index
    %21 = vector.load %arg14[%c0_15, %c0_16] : memref<1x64xf32, #tpu.memory_space<vmem>>, vector<1x64xf32>
    %cst_17 = arith.constant dense<0xFF800000> : vector<64xf32>
    %22 = vector.multi_reduction <maximumf>, %20, %cst_17 [0] : vector<64x64xf32> to vector<64xf32>
    %23 = vector.shape_cast %22 : vector<64xf32> to vector<1x64xf32>
    %24 = arith.maximumf %21, %23 : vector<1x64xf32>
    %25 = arith.subf %21, %24 : vector<1x64xf32>
    %26 = math.exp %25 : vector<1x64xf32>
    %27 = vector.broadcast %24 : vector<1x64xf32> to vector<64x64xf32>
    %28 = arith.subf %20, %27 : vector<64x64xf32>
    %29 = math.exp %28 : vector<64x64xf32>
    %c0_18 = arith.constant 0 : index
    %c0_19 = arith.constant 0 : index
    %30 = vector.load %arg15[%c0_18, %c0_19] : memref<1x64xf32, #tpu.memory_space<vmem>>, vector<1x64xf32>
    %31 = arith.mulf %26, %30 : vector<1x64xf32>
    %cst_20 = arith.constant dense<0.000000e+00> : vector<64xf32>
    %32 = vector.multi_reduction <add>, %29, %cst_20 [0] : vector<64x64xf32> to vector<64xf32>
    %33 = vector.shape_cast %32 : vector<64xf32> to vector<1x64xf32>
    %34 = arith.addf %31, %33 : vector<1x64xf32>
    %c0_21 = arith.constant 0 : index
    %c0_22 = arith.constant 0 : index
    %35 = vector.load %arg15[%c0_21, %c0_22] : memref<1x64xf32, #tpu.memory_space<vmem>>, vector<1x64xf32>
    tpu.vector_store %arg15[%c0_21, %c0_22], %34 {strides = array<i32>} : memref<1x64xf32, #tpu.memory_space<vmem>>, vector<1x64xf32>,
    %c0_23 = arith.constant 0 : index
    %c0_24 = arith.constant 0 : index
    %36 = vector.load %arg16[%c0_23, %c0_24] : memref<32x64xf32, #tpu.memory_space<vmem>>, vector<32x64xf32>
    %37 = vector.broadcast %26 : vector<1x64xf32> to vector<32x64xf32>
    %38 = arith.mulf %37, %36 : vector<32x64xf32>
    %39 = arith.truncf %17 : vector<32x64xf32> to vector<32x64xbf16>
    %40 = arith.truncf %29 : vector<64x64xf32> to vector<64x64xbf16>
    %cst_25 = arith.constant dense<0.000000e+00> : vector<32x64xf32>
    %41 = tpu.matmul %39, %40, %cst_25 {dimension_numbers = #tpu.dot_dimension_numbers<[1], [0], [0], [1], [0, 0, 1, 1], [], []>} : vector<32x64xbf16>, vector<64x64xbf16>, vector<32x64xf32> -> vector<32x64xf32>
    %42 = arith.addf %38, %41 : vector<32x64xf32>
    %c0_26 = arith.constant 0 : index
    %c0_27 = arith.constant 0 : index
    %43 = vector.load %arg16[%c0_26, %c0_27] : memref<32x64xf32, #tpu.memory_space<vmem>>, vector<32x64xf32>
    tpu.vector_store %arg16[%c0_26, %c0_27], %42 {strides = array<i32>} : memref<32x64xf32, #tpu.memory_space<vmem>>, vector<32x64xf32>,
    %c0_28 = arith.constant 0 : index
    %c0_29 = arith.constant 0 : index
    %44 = vector.load %arg14[%c0_28, %c0_29] : memref<1x64xf32, #tpu.memory_space<vmem>>, vector<1x64xf32>
    tpu.vector_store %arg14[%c0_28, %c0_29], %24 {strides = array<i32>} : memref<1x64xf32, #tpu.memory_space<vmem>>, vector<1x64xf32>,
    %c0_i32_30 = arith.constant 0 : i32
    %45 = arith.cmpi eq, %arg2, %c0_i32_30 : i32
    %46 = arith.extui %45 : i1 to i32
    %c0_i32_31 = arith.constant 0 : i32
    %47 = arith.cmpi ne, %46, %c0_i32_31 : i32
    scf.if %47 {
      %c0_32 = arith.constant 0 : index
      %c0_33 = arith.constant 0 : index
      %48 = vector.load %arg15[%c0_32, %c0_33] : memref<1x64xf32, #tpu.memory_space<vmem>>, vector<1x64xf32>
      %49 = tpu.reciprocal %48 {approx = true} : vector<1x64xf32> -> vector<1x64xf32>
      %c0_34 = arith.constant 0 : index
      %c0_35 = arith.constant 0 : index
      %50 = vector.load %arg16[%c0_34, %c0_35] : memref<32x64xf32, #tpu.memory_space<vmem>>, vector<32x64xf32>
      %51 = vector.broadcast %49 : vector<1x64xf32> to vector<32x64xf32>
      %52 = arith.mulf %50, %51 : vector<32x64xf32>
      %c0_36 = arith.constant 0 : index
      %c0_37 = arith.constant 0 : index
      %53 = memref.load %arg11[%c0_36, %c0_37] : memref<1x1xf32, #tpu.memory_space<smem>>
      %54 = vector.broadcast %53 : f32 to vector<32x64xf32>
      %55 = arith.mulf %54, %52 : vector<32x64xf32>
      %c0_38 = arith.constant 0 : index
      %c0_39 = arith.constant 0 : index
      %c0_40 = arith.constant 0 : index
      %56 = vector.load %arg3[%c0_38, %c0_39, %c0_40] : memref<1x32x64xf32, #tpu.memory_space<vmem>>, vector<1x32x64xf32>
      %57 = vector.shape_cast %56 : vector<1x32x64xf32> to vector<32x64xf32>
      %58 = arith.addf %55, %57 : vector<32x64xf32>
      %c0_41 = arith.constant 0 : index
      %c0_42 = arith.constant 0 : index
      %c0_43 = arith.constant 0 : index
      %59 = vector.load %arg12[%c0_41, %c0_42, %c0_43] : memref<1x32x64xf32, #tpu.memory_space<vmem>>, vector<1x32x64xf32>
      %60 = vector.shape_cast %59 : vector<1x32x64xf32> to vector<32x64xf32>
      %61 = vector.shape_cast %58 : vector<32x64xf32> to vector<1x32x64xf32>
      tpu.vector_store %arg12[%c0_41, %c0_42, %c0_43], %61 {strides = array<i32>} : memref<1x32x64xf32, #tpu.memory_space<vmem>>, vector<1x32x64xf32>,
    } else {
    }
    return
  }
  func.func @transform_0(%arg0: i32, %arg1: i32, %arg2: i32) -> (i32, i32, i32) {
    %c0_i32 = arith.constant 0 : i32
    %c0_i32_0 = arith.constant 0 : i32
    return %arg0, %c0_i32, %arg1 : i32, i32, i32
  }
  func.func @transform_1(%arg0: i32, %arg1: i32, %arg2: i32) -> (i32, i32, i32) {
    %c0_i32 = arith.constant 0 : i32
    %c0_i32_0 = arith.constant 0 : i32
    return %arg0, %c0_i32, %arg2 : i32, i32, i32
  }
  func.func @transform_2(%arg0: i32, %arg1: i32, %arg2: i32) -> (i32, i32) {
    %c0_i32 = arith.constant 0 : i32
    %c0_i32_0 = arith.constant 0 : i32
    %c0_i32_1 = arith.constant 0 : i32
    return %c0_i32, %c0_i32_0 : i32, i32
  }
  func.func @transform_3(%arg0: i32, %arg1: i32, %arg2: i32) -> (i32, i32) {
    %c0_i32 = arith.constant 0 : i32
    %c0_i32_0 = arith.constant 0 : i32
    %c0_i32_1 = arith.constant 0 : i32
    return %c0_i32, %c0_i32_0 : i32, i32
  }
  func.func @transform_4(%arg0: i32, %arg1: i32, %arg2: i32) -> (i32, i32) {
    %c0_i32 = arith.constant 0 : i32
    %c0_i32_0 = arith.constant 0 : i32
    %c0_i32_1 = arith.constant 0 : i32
    return %c0_i32, %c0_i32_0 : i32, i32
  }
  func.func @transform_5(%arg0: i32, %arg1: i32, %arg2: i32) -> (i32, i32) {
    %c0_i32 = arith.constant 0 : i32
    %c0_i32_0 = arith.constant 0 : i32
    %c0_i32_1 = arith.constant 0 : i32
    return %c0_i32, %c0_i32_0 : i32, i32
  }
  func.func @transform_6(%arg0: i32, %arg1: i32, %arg2: i32) -> (i32, i32) {
    %c0_i32 = arith.constant 0 : i32
    %c0_i32_0 = arith.constant 0 : i32
    %c0_i32_1 = arith.constant 0 : i32
    return %c0_i32, %c0_i32_0 : i32, i32
  }
  func.func @transform_7(%arg0: i32, %arg1: i32, %arg2: i32) -> (i32, i32) {
    %c0_i32 = arith.constant 0 : i32
    %c0_i32_0 = arith.constant 0 : i32
    %c0_i32_1 = arith.constant 0 : i32
    return %c0_i32, %c0_i32_0 : i32, i32
  }
  func.func @transform_8(%arg0: i32, %arg1: i32, %arg2: i32) -> (i32, i32) {
    %c0_i32 = arith.constant 0 : i32
    %c0_i32_0 = arith.constant 0 : i32
    %c0_i32_1 = arith.constant 0 : i32
    return %c0_i32, %c0_i32_0 : i32, i32
  }
  func.func @transform_9(%arg0: i32, %arg1: i32, %arg2: i32) -> (i32, i32, i32) {
    %c0_i32 = arith.constant 0 : i32
    %c0_i32_0 = arith.constant 0 : i32
    return %arg0, %c0_i32, %arg1 : i32, i32, i32
  }
}

</mosaic_0001>

<bundles_post_ra>
// kernel: tpu_custom_call.1
= control target key start
LH: loop header
LB: loop body
LE: loop exit
PB: predicated region body
PF: predicated region fallthrough
CT: control target
= control target key end

     0   :  { %s1835_s0 = inlined_call_operand.hbm [shape: f32[2,32,64], index: 0, kind: input, shape index: {}]   ;;  %s1836_s1 = inlined_call_operand.hbm [shape: f32[2,32,64], index: 1, kind: input, shape index: {}]   ;;  %s1837_s2 = inlined_call_operand.vmem [shape: f32[4,32], index: 2, kind: input, shape index: {}]   ;;  %s1838_s3 = inlined_call_operand.vmem [shape: f32[4,1], index: 3, kind: input, shape index: {}]   ;;  %s1839_s4 = inlined_call_operand.vmem [shape: f32[4,32], index: 4, kind: input, shape index: {}]   ;;  %s1840_s5 = inlined_call_operand.vmem [shape: f32[4,1], index: 5, kind: input, shape index: {}]   ;;  %s1841_s6 = inlined_call_operand.vmem [shape: f32[32,32], index: 6, kind: input, shape index: {}]   ;;  %s1842_s7 = inlined_call_operand.vmem [shape: f32[32,1], index: 7, kind: input, shape index: {}]   ;;  %s1843_s8 = inlined_call_operand.<no memory space> [shape: f32[1,1], index: 8, kind: input, shape index: {}]   ;;  %s1844_s9 = inlined_call_operand.hbm [shape: f32[2,32,64], index: 9, kind: output, shape index: {}]  }
   0x1   :  { %1852 = sst [smem:[#allocation19_spill]] %s1835_s0 }
   0x2   :  { %14 = sst [smem:[#allocation6]] %s1843_s8 }
   0x3   :  { %15 = vsyncpa [#allocation8], 0 }
   0x4   :  { %17 = vsyncpa [#allocation8 + $0x1], 0 }
   0x5   :  { %18 = vsyncpa [#allocation11], 0 }
   0x6   :  { %20 = vsyncpa [#allocation11 + $0x1], 0 }
   0x7   :  { %21 = vsyncpa [#allocation9], 0 }
   0x8   :  { %23 = vsyncpa [#allocation9 + $0x1], 0  ;;  %s1477_s11 = smov 0   ;;  %s1479_s12 = smov 0  }
   0x9   :  { %s1481_s13 = smov 0   ;;  %s1483_s14 = smov 0  }
   0xa   :  { %s1485_s15 = smov 0   ;;  %s1487_s16 = smov 0  }
   0xb LB: > { %1853 = sst [smem:[#allocation16_spill]] %s1399_s13  ;;  %s1068_s8 = sadd.s32 4294967295, %s1411_s16   ;;  %s1411_s16 = sphi %s1487_s16, %s29_s16   ;;  %s1407_s15 = sphi %s1485_s15, %s1878_s15   ;;  %s1403_s14 = sphi %s1483_s14, %s1877_s14   ;;  %s1399_s13 = sphi %s1481_s13, %s1873_s13   ;;  %s1395_s12 = sphi %s1479_s12, %s1876_s12   ;;  %s1391_s11 = sphi %s1477_s11, %s1875_s11  }
   0xc   : > { %s1069_s17 = sadd.s32 4294967294, %s1411_s16   ;;  %s48_s18 = sadd.s32 1, %s1407_s15 }
   0xd   : > { %s57_s19 = sadd.s32 1, %s1399_s13  ;;  %p50_p0 = scmp.ge.s32.totalorder %s48_s18, 2 }
   0xe   : > { %p64_p1 = scmp.ne.s32.totalorder %s1399_s13, %s1395_s12  ;;  %p65_p2 = scmp.eq.s32.totalorder %s1411_s16, 0 }
   0xf   : > { %p70_p3 = scmp.ne.s32.totalorder %s1395_s12, %s1391_s11  ;;  %s1880_s18 = smov (%p50_p0, %s48_s18), 0 }
  0x10   : > { %1854 = sst [smem:[#allocation17_spill]] %s1880_s18  ;;  %p1518_p4 = por %p65_p2, %p64_p1 }
  0x11   : > { %p71_p5 = scmp.eq.s32.totalorder %s1068_s8, 0  ;;  %s52_s21 = ssub.s32 %s1407_s15, %s1880_s18 }
  0x12   : > { %p271_p6 = scmp.eq.s32.totalorder %s1068_s8, 1  ;;  %p55_p7 = scmp.eq.s32.totalorder %s52_s21, 0 }
  0x13   : > { %p1524_p8 = por %p71_p5, %p70_p3  ;;  %p277_p10 = scmp.eq.s32.totalorder %s1069_s17, 1 }
  0x14   : > { %p1528_p9 = por %p271_p6, %p64_p1  ;;  %p1185_p13 = scmp.lt.s32.totalorder %s1411_s16, 2 }
  0x15   : > { %s1856_s22 = scalar_select %p1524_p8, 1, 0 }
  0x16   : > { %s1857_s23 = scalar_select %p1528_p9, 1, 0 }
  0x17   : > { %s1533_s24 = scalar_select %p55_p7, %s1399_s13, %s57_s19  }
  0x18   : > { %p1535_p11 = por %p277_p10, %p70_p3  ;;  %s1542_s26 = sand.u32 1, %s1399_s13  }
  0x19   : > { %1858 = sst [smem:[#allocation18_spill]] %s1533_s24  ;;  %s1845_s27 = sshll.u32 %s1542_s26, 5 }
  0x1a   : > { %s1859_s25 = scalar_select %p1535_p11, 1, 0 }
  0x1b   : > { %s1846_s28 = sshll.u32 %s1407_s15, 9  ;;  %s1860_s0 = sld [smem:[#allocation19_spill]] }
  0x1c   : > { %s322_s8 = scalar_lea.vmem [#allocation7], %s1845_s27  ;;  %p1559_p0 = pnand %p1185_p13, %p1518_p4 }
  0x1d   : > { %s330_s17 = sshll.u32 %s322_s8, 4  ;;  %s1555_s17 = int_to_ptr.vmem [resolvable:$true] %s330_s17 }
  0x1e   : > { %p1267_p3 = pneg %p1559_p0 }
  0x21   : > { %s1551_s10 = scalar_lea.hbm %s1860_s0, %s1846_s28  ;;  %s1270_s20 = scalar_lea.hbm %s1860_s0, 1024 }
  0x22   : > { %s1265_s29 = scalar_lea.hbm %s1551_s10, 512  ;;  %p1271_p4 = scmp.lt.u32.totalorder %s1551_s10, %s1860_s0 }
  0x23   : > { %p1266_p2 = scmp.ne.s32.totalorder %s1551_s10, %s1265_s29  ;;  %p1272_p7 = scmp.lt.u32.totalorder %s1270_s20, %s1265_s29 }
  0x24   : > { %p1274_p13 = scmp.lt.u32.totalorder %s1265_s29, %s1551_s10 }
  0x25   : > { %p1268_p5 = pnand %p1267_p3, %p1266_p2  ;;  %p1273_p10 = por %p1272_p7, %p1271_p4 }
  0x27   : > { %p1269_p6 = pneg %p1268_p5  ;;  %p1275_p12 = por %p1274_p13, %p1273_p10 }
  0x29   : > { %p1276_p1 = pnand %p1275_p12, %p1269_p6 }
  0x2b   : > { %1279 = shalt.err (!%p1276_p1)
}
  0x2c   : > { %s1280_s21 = scalar_lea.vmem %s1555_s17, 512  ;;  %s1413_s30 = smov [#allocation7]  }
  0x2d   : > { %p1281_p2 = scmp.ne.s32.totalorder %s1555_s17, %s1280_s21  ;;  %s1285_s8 = sshll.u32 %s1413_s30, 4  ;;  %s1286_s8 = int_to_ptr.vmem [resolvable:$false] %s1285_s8 }
  0x2e   : > { %s1287_s27 = scalar_lea.vmem %s1286_s8, 1024  ;;  %p1288_p9 = scmp.lt.s32.totalorder %s1555_s17, %s1286_s8 }
  0x2f   : > { %p1283_p5 = pnand %p1281_p2, %p1267_p3  ;;  %p1289_p4 = scmp.lt.s32.totalorder %s1287_s27, %s1280_s21 }
  0x31   : > { %p1284_p11 = pneg %p1283_p5  ;;  %p1290_p7 = por %p1289_p4, %p1288_p9 }
  0x33   : > { %p1291_p10 = pnand %p1290_p7, %p1284_p11 }
  0x35   : > { %1294 = shalt.err (!%p1291_p10)
}
  0x36   : > { %s1850_s28 = smov 128   ;;  %s1415_s29 = smov 8  }
  0x37   : > { %s1862_s21 = scalar_lea.sflag [#allocation8], %s1542_s26  ;;  %p360_p9 = scmp.lt.s32.totalorder %s1411_s16, 3 }
  0x38   : > { %1177 = dma.hbm_to_vmem [thread:$0]  (!%p1559_p0), %s1551_s10, 512, %s1555_s17, %s1862_s21, %s1850_s28, %s1850_s28, %s1415_s29  }
  0x39   : > { %s1863_s20 = sshll.u32 %s1407_s15, 9  ;;  %p1864_p11 = scmp.ge.s32.totalorder %s1411_s16, 1 }
  0x3a   : > { %s1601_s27 = scalar_lea.hbm %s1836_s1, %s1863_s20  ;;  %s1866_s18 = sshll.u32 %s1542_s26, 5 }
  0x3b   : > { %p1605_p12 = pnand %p1864_p11, %p360_p9  ;;  %s344_s24 = scalar_lea.vmem [#allocation10], %s1866_s18 }
  0x3c   : > { %s352_s13 = sshll.u32 %s344_s24, 4  ;;  %s341_s10 = scalar_lea.sflag [#allocation11], %s1542_s26  ;;  %s1611_s13 = int_to_ptr.vmem [resolvable:$true] %s352_s13 }
  0x3d   : > { %s1295_s17 = scalar_lea.hbm %s1601_s27, 512  ;;  %s1300_s30 = scalar_lea.hbm %s1836_s1, 1024 }
  0x3e   : > { %p1296_p1 = scmp.ne.s32.totalorder %s1601_s27, %s1295_s17  ;;  %p1301_p2 = scmp.lt.u32.totalorder %s1601_s27, %s1836_s1 }
  0x3f   : > { %p1302_p5 = scmp.lt.u32.totalorder %s1300_s30, %s1295_s17  ;;  %p1304_p7 = scmp.lt.u32.totalorder %s1295_s17, %s1601_s27 }
  0x40   : > { %p1298_p6 = pnand %p1296_p1, %p1267_p3 }
  0x41   : > { %p1303_p4 = por %p1302_p5, %p1301_p2 }
  0x42   : > { %p1299_p13 = pneg %p1298_p6 }
  0x43   : > { %p1305_p10 = por %p1304_p7, %p1303_p4 }
  0x45   : > { %p1306_p9 = pnand %p1305_p10, %p1299_p13 }
  0x47   : > { %1309 = shalt.err (!%p1306_p9)
}
  0x48   : > { %s1310_s18 = scalar_lea.vmem %s1611_s13, 512  ;;  %s1416_s24 = smov [#allocation10]  }
  0x49   : > { %p1311_p11 = scmp.ne.s32.totalorder %s1611_s13, %s1310_s18  ;;  %s1315_s21 = sshll.u32 %s1416_s24, 4  ;;  %s1316_s21 = int_to_ptr.vmem [resolvable:$false] %s1315_s21 }
  0x4a   : > { %s1317_s28 = scalar_lea.vmem %s1316_s21, 1024  ;;  %p1318_p8 = scmp.lt.s32.totalorder %s1611_s13, %s1316_s21 }
  0x4b   : > { %p1313_p1 = pnand %p1311_p11, %p1267_p3  ;;  %p1319_p2 = scmp.lt.s32.totalorder %s1317_s28, %s1310_s18 }
  0x4d   : > { %p1314_p6 = pneg %p1313_p1  ;;  %p1320_p5 = por %p1319_p2, %p1318_p8 }
  0x4f   : > { %p1321_p4 = pnand %p1320_p5, %p1314_p6 }
  0x51   : > { %1324 = shalt.err (!%p1321_p4)
}
  0x52   : > { %s1867_s17 = smov 128   ;;  %364 = sbr.rel (%p1605_p12) target bundleno = 952 (0x3b8), region = 56 }
  0x53   : > { %1180 = dma.hbm_to_vmem [thread:$0]  (!%p1559_p0), %s1601_s27, 512, %s1611_s13, %s341_s10, %s1867_s17, %s1867_s17, %s1415_s29  }
  0x54   : > { %s1645_s20 = sand.u32 (!%p1605_p12), 1, %s1395_s12   ;;  %p1868_p8 = scmp.ne.s32.totalorder (!%p1605_p12), %s1856_s22, 0 }
  0x55   : > { %s1648_s30 = sshll.u32 (!%p1605_p12), %s1645_s20, 5  ;;  %s367_s19 = scalar_lea.sflag (!%p1605_p12), [#allocation8], %s1645_s20 }
  0x56   : > { %s370_s8 = scalar_lea.vmem (!%p1605_p12), [#allocation7], %s1648_s30 }
  0x59   : > { %1378 = dma.done.wait (%p1868_p8), %s367_s19, 512  }
  0x5a   : > { %1380 = vsyncadd (%p1868_p8), %s367_s19, 4294966784  ;;  %s376_s0 = scalar_lea.sflag [#allocation11], %s1645_s20  ;;  %s379_s13 = scalar_lea.vmem [#allocation10], %s1648_s30 }
  0x5b   : > { %1382 = dma.done.wait (%p1868_p8), %s376_s0, 512  }
  0x5c   : > { %1384 = vsyncadd (%p1868_p8), %s376_s0, 4294966784  ;;  %v1417_v0 = vmov 0.0   ;;  %vm1418_vm0 = vmmov 0   ;;  %v1419_v1 = vmov 0   ;;  %v1667_v2 = vld [vmem:[%s370_s8] sm:$0xff]  ;;  %v1669_v3 = vld [vmem:[%s370_s8 + $0x8] sm:$0xff] }
  0x5d   : > { %1121 = vmatprep.subr.bf16.mxu0 %v1417_v0  ;;  %1129 = vmatprep.subr.bf16.mxu1 %v1417_v0  ;;  %v493_v4 = vld [vmem:[%s379_s13] sm:$0xff]  ;;  %v428_v5 = vpack.c.bf16 %v1669_v3, %v1667_v2  ;;  %v494_v6 = vld [vmem:[%s379_s13 + $0x8] sm:$0xff]  ;;  %v1673_v7 = vld [vmem:[%s370_s8 + $0x10] sm:$0xff]  ;;  %vm438_vm1 = vcmask 261120   ;;  %vm483_vm2 = vcmask 517120   ;;  %vm667_vm3 = vcmask 1041408  }
  0x5e   : > { %1125 = vmatprep.mubr.msk.bf16.mxu0 %vm1418_vm0, %v1417_v0  ;;  %1133 = vmatprep.mubr.msk.bf16.mxu1 %vm1418_vm0, %v1417_v0  ;;  %v1675_v8 = vld [vmem:[%s370_s8 + $0x18] sm:$0xff]  ;;  %v497_v9 = vpack.c.bf16 %v494_v6, %v493_v4  ;;  %v495_v10 = vld [vmem:[%s379_s13 + $0x10] sm:$0xff]  ;;  %v552_v18 = vld [vmem:[%s1841_s6 + $0x8] sm:$0xff]  ;;  %vm488_vm4 = vcmask 523264   ;;  %vm654_vm5 = vcmask 31744   ;;  %vm485_vm6 = vcmask 516096  }
  0x5f   : > { %1243 = vset.pattern.permute.xlu0 %v1419_v1  ;;  %v496_v11 = vld [vmem:[%s379_s13 + $0x18] sm:$0xff]  ;;  %1122 = vmatpush3.bf16.msra.mxu0 %v428_v5  ;;  %v429_v12 = vpack.c.bf16 %v1675_v8, %v1673_v7  ;;  %v558_v23 = vld [vmem:[%s1842_s7 + $0x8] sm:$0xff]  ;;  %v553_v24 = vld [vmem:[%s1841_s6 + $0x10] sm:$0xff]  ;;  %489 = vst.msk [vmem:[#allocation5] sm:$0xff] %vm488_vm4, %v1417_v0  ;;  %s922_s19 = sld [smem:[#allocation6]]  ;;  %s1099_s8 = sshll.u32 %s1403_s14, 9 }
  0x60   : > { %v430_v13 = vld [vmem:[%s1837_s2] sm:$0xf]  ;;  %1130 = vmatpush3.bf16.msra.mxu1 %v497_v9  ;;  %1123 = vmatprep.subr.bf16.mxu0 %v1417_v0  ;;  %v498_v14 = vpack.c.bf16 %v496_v11, %v495_v10  ;;  %v554_v25 = vld [vmem:[%s1841_s6 + $0x18] sm:$0xff]  ;;  %v559_v27 = vld [vmem:[%s1842_s7 + $0x10] sm:$0xff]  ;;  %490 = vst.msk [vmem:[#allocation5 + $0x8] sm:$0xff] %vm488_vm4, %v1417_v0  ;;  %s418_s0 = scalar_lea.vmem [#allocation12], %s1648_s30  ;;  %s1780_s29 = scalar_lea.hbm %s1844_s9, %s1099_s8 }
  0x61   : > { %v499_v15 = vld [vmem:[%s1839_s4] sm:$0xf]  ;;  %1131 = vmatprep.subr.bf16.mxu1 %v1417_v0  ;;  %v431_v19 = vpack.c.bf16 %v430_v13, %v430_v13  ;;  %v556_v26 = vpack.c.bf16 %v554_v25, %v553_v24  ;;  %v560_v28 = vld [vmem:[%s1842_s7 + $0x18] sm:$0xff]  ;;  %491 = vst.msk [vmem:[#allocation5 + $0x10] sm:$0xff] %vm488_vm4, %v1417_v0  ;;  %492 = vst.msk [vmem:[#allocation5 + $0x18] sm:$0xff] %vm488_vm4, %v1417_v0  ;;  %s955_s13 = sshll.u32 %s418_s0, 4  ;;  %s1782_s13 = int_to_ptr.vmem [resolvable:$true] %s955_s13 }
  0x62   : > { %v501_v16 = vld [vmem:[%s1840_s5] sm:$0xf]  ;;  %v500_v21 = vpack.c.bf16 %v499_v15, %v499_v15  ;;  %487 = vst.msk [vmem:[#allocation4] sm:$0x1] %vm485_vm6, %v1417_v0  ;;  %s941_s14 = scalar_lea.sflag [#allocation9], %s1645_s20  ;;  %s1325_s30 = scalar_lea.vmem %s1782_s13, 512 }
  0x63   : > { %v551_v17 = vld [vmem:[%s1841_s6] sm:$0xff]  ;;  %504 = vperm.xlu0 %1243, %v501_v16   ;;  %1124 = vmatpush3.bf16.msra.mxu0 %v429_v12  ;;  %p1326_p0 = scmp.ne.s32.totalorder %s1782_s13, %s1325_s30  ;;  %p1869_p3 = scmp.ne.s32.totalorder %s1857_s23, 0 }
  0x64   : > { %v432_v20 = vld [vmem:[%s1838_s3] sm:$0xf]  ;;  %1132 = vmatpush3.bf16.msra.mxu1 %v498_v14  ;;  %1137 = vmatprep.subr.bf16.mxu0 %v497_v9  ;;  %v555_v22 = vpack.c.bf16 %v552_v18, %v551_v17  ;;  %s1421_s27 = smov [#allocation12]  }
  0x65   : > { %v557_v55 = vld [vmem:[%s1842_s7] sm:$0xff]  ;;  %p1327_p12 = pnand %p1326_p0, %p1869_p3  ;;  %s1329_s10 = sshll.u32 %s1421_s27, 4  ;;  %s1330_s10 = int_to_ptr.vmem [resolvable:$false] %s1329_s10 }
  0x66   : > { %1126 = vmatmul.mubr.msk.bf16.vlgmr.msra.gmra.mrb[0].mxu0 %vm438_vm1, %v431_v19  ;;  %s1331_s18 = scalar_lea.vmem %s1330_s10, 1024  ;;  %p1332_p7 = scmp.lt.s32.totalorder %s1782_s13, %s1330_s10 }
  0x67   : > { %435 = vperm.xlu0 %1243, %v432_v20   ;;  %1134 = vmatmul.mubr.msk.bf16.vlgmr.msra.gmra.mrb[0].mxu1 %vm438_vm1, %v500_v21  ;;  %p1328_p13 = pneg %p1327_p12  ;;  %p1333_p10 = scmp.lt.s32.totalorder %s1331_s18, %s1325_s30 }
  0x68   : > { %1138 = vmatpush3.bf16.msra.mxu0 %v497_v9  ;;  %1141 = vmatprep.mubr.msk.bf16.mxu0 %vm438_vm1, %v555_v22 }
  0x69   : > { %1139 = vmatprep.subr.bf16.mxu0 %v498_v14  ;;  %p1334_p9 = por %p1333_p10, %p1332_p7 }
  0x6b   : > { %568 = vperm.xlu0 %1243, %v558_v23   ;;  %p1335_p11 = pnand %p1334_p9, %p1328_p13 }
  0x6c   : > { %1140 = vmatpush3.bf16.msra.mxu0 %v498_v14 }
  0x6f   : > { %573 = vperm.xlu0 %1243, %v559_v27   ;;  %1142 = vmatmul.mubr.msk.bf16.vlgmr.msra.gmra.mrb[4].mxu0 %vm438_vm1, %v556_v26 }
  0x73   : > { %578 = vperm.xlu0 %1243, %v560_v28  }
  0xe2   : > { %v505_v29 = vpop.permute.xlu0 %504 }
  0xe6   : > { %v436_v30 = vpop.permute.xlu0 %435 }
  0xea   : > { %v569_v31 = vpop.permute.xlu0 %568 }
  0xee   : > { %v574_v42 = vpop.permute.xlu0 %573 }
  0xf2   : > { %v579_v47 = vpop.permute.xlu0 %578 }
 0x139   : > { %v476_v32 = vpop.f32.mrb[0].mxu0 }
 0x13a   : > { %v545_v33 = vpop.f32.mrb[0].mxu1  ;;  %v477_v34 = vadd.f32 %v476_v32, %v436_v30  ;;  %v1127_v35 = vpop.f32.mrb[1].mxu0  ;;  %v764_v30 = vlaneseq }
 0x13b   : > { %v1135_v36 = vpop.f32.mrb[1].mxu1  ;;  %v546_v37 = vadd.f32 %v545_v33, %v505_v29  ;;  %v479_v38 = vpop.f32.mrb[2].mxu0 }
 0x13c   : > { %v482_v39 = vpack.c.bf16 %v477_v34, %v477_v34  ;;  %v548_v40 = vpop.f32.mrb[2].mxu1  ;;  %v1128_v41 = vpop.f32.mrb[3].mxu0  ;;  %v765_v33 = vshrl.u32 %v764_v30, 7 }
 0x13d   : > { %v1136_v43 = vpop.f32.mrb[3].mxu1  ;;  %v636_v44 = vpack.c.bf16 %v546_v37, %v546_v37 }
 0x13e   : > { %484 = vst.msk [vmem:[#allocation2] sm:$0x3] %vm483_vm2, %v482_v39  ;;  %v1748_v37 = vsub.s32 0, %v765_v33  ;;  %v793_v33 = vld [vmem:[#allocation4] sm:$0x1] }
 0x13f   : > { %638 = vxpose.xlu1.c.b16.start.end [1/1] (short) (narrow) %v636_v44, 64 }
 0x142   : > { %v1143_v45 = vpop.f32.mrb[4].mxu0 }
 0x143   : > { %v621_v46 = vpop.f32.mrb[5].mxu0  ;;  %1244 = vset.pattern.permute.xlu1 %v1419_v1  ;;  %v1719_v49 = vadd.f32 %v1143_v45, %v574_v42  ;;  %v1420_v1 = vmov -inf  }
 0x144   : > { %v1144_v48 = vpop.f32.mrb[6].mxu0  ;;  %486 = vst.msk [vmem:[#allocation3] sm:$0x1] %vm485_vm6, %v1420_v1 }
 0x145   : > { %v1721_v50 = vadd.f32 %v1144_v48, %v579_v47  ;;  %v624_v51 = vpop.f32.mrb[7].mxu0  ;;  %v637_v52 = vld [vmem:[#allocation2] sm:$0x3] }
 0x146   : > { %1167 = vmatprep.subr.msk.bf16.mxu1 %vm667_vm3, %v637_v52  ;;  %v669_v54 = vsel %vm667_vm3, %v637_v52, 0  ;;  %v625_v61 = vadd.f32 %v624_v51, %v569_v31 }
 0x147   : > { %v834_v53 = vpack.c.bf16 %v1721_v50, %v1719_v49  ;;  %1146 = vmatpush3.bf16.msra.mxu1 %v669_v54  ;;  %v820_v50 = vld [vmem:[#allocation5 + $0x8] sm:$0xff] }
 0x14b   : > { %v736_v35 = vld [vmem:[#allocation3] sm:$0x1] }
 0x14f   : > { %563 = vperm.xlu1 %1244, %v557_v55  }
 0x1a5   : > { %v646_v56 = vpop.trf.xlu1 }
 0x1a6   : > { %1147 = vmatprep.mubr.msk.bf16.mxu1 %vm654_vm5, %v646_v56 }
 0x1a9   : > { %v647_v57 = vpop.trf.xlu1 }
 0x1aa   : > { %1148 = vmatmul.mubr.msk.bf16.vlgmr.msra.gmra.mrb[4].mxu1 %vm654_vm5, %v647_v57 }
 0x1ad   : > { %v648_v58 = vpop.trf.xlu1 }
 0x1ae   : > { %1151 = vmatprep.mubr.msk.bf16.mxu1 %vm654_vm5, %v648_v58 }
 0x1b1   : > { %v649_v59 = vpop.trf.xlu1 }
 0x1b2   : > { %1152 = vmatmul.mubr.msk.bf16.gmra.mrb[8].mxu1 %vm654_vm5, %v649_v59 }
 0x1ce   : > { %v564_v60 = vpop.permute.xlu1 %563 }
 0x1cf   : > { %v622_v62 = vadd.f32 %v621_v46, %v564_v60 }
 0x1d1   : > { %v833_v63 = vpack.c.bf16 %v625_v61, %v622_v62 }
 0x1d3   : > { %1163 = vmatprep.mubr.msk.bf16.mxu0 %vm488_vm4, %v833_v63 }
 0x27d   : > { %v1149_v4 = vpop.f32.mrb[4].mxu1 }
 0x27e   : > { %v705_v5 = vpop.f32.mrb[5].mxu1  ;;  %v740_v11 = vsel %vm488_vm4, %v1149_v4, -inf }
 0x27f   : > { %v1150_v6 = vpop.f32.mrb[6].mxu1  ;;  %v738_v14 = vsel %vm488_vm4, %v705_v5, -inf }
 0x280   : > { %v708_v9 = vpop.f32.mrb[7].mxu1  ;;  %v741_v18 = vsel %vm488_vm4, %v1150_v6, -inf }
 0x281   : > { %v739_v21 = vsel %vm488_vm4, %v708_v9, -inf }
 0x285   : > { %v1153_v10 = vpop.f32.mrb[8].mxu1 }
 0x286   : > { %v746_v12 = vsel %vm488_vm4, %v1153_v10, -inf  ;;  %v721_v13 = vpop.f32.mrb[9].mxu1 }
 0x287   : > { %v747_v15 = vmax.f32 %v740_v11, %v746_v12  ;;  %v742_v16 = vsel %vm488_vm4, %v721_v13, -inf  ;;  %v1154_v17 = vpop.f32.mrb[10].mxu1 }
 0x288   : > { %v743_v19 = vmax.f32 %v738_v14, %v742_v16  ;;  %v748_v0 = vsel %vm488_vm4, %v1154_v17, -inf  ;;  %v724_v20 = vpop.f32.mrb[11].mxu1 }
 0x289   : > { %v749_v22 = vmax.f32 %v741_v18, %v748_v0  ;;  %v744_v23 = vsel %vm488_vm4, %v724_v20, -inf }
 0x28a   : > { %v745_v24 = vmax.f32 %v739_v21, %v744_v23 }
 0x28b   : > { %v751_v25 = vmax.f32 %v747_v15, %v749_v22 }
 0x28c   : > { %v750_v26 = vmax.f32 %v743_v19, %v745_v24 }
 0x28e   : > { %v752_v27 = vmax.f32 %v750_v26, %v751_v25 }
 0x290   : > { %v753_v28 = vrot.slane %v752_v27, 4 }
 0x292   : > { %v754_v29 = vmax.f32 %v752_v27, %v753_v28 }
 0x294   : > { %v755_v31 = vrot.slane %v754_v29, 2 }
 0x296   : > { %v756_v32 = vmax.f32 %v754_v29, %v755_v31 }
 0x298   : > { %v757_v34 = vrot.slane %v756_v32, 1 }
 0x29a   : > { %v758_v36 = vmax.f32 %v756_v32, %v757_v34 }
 0x29c   : > { %v759_v38 = vmax.f32 %v736_v35, %v758_v36 }
 0x29e   : > { %v767_v39 = vrot.slane %v759_v38, %v1748_v37  ;;  %902 = vst.msk [vmem:[#allocation3] sm:$0x1] %vm485_vm6, %v759_v38  ;;  %v760_v14 = vsub.f32 %v736_v35, %v759_v38 }
 0x2a0   : > { %v769_v40 = vsub.f32 %v705_v5, %v767_v39  ;;  %v770_v41 = vsub.f32 %v708_v9, %v767_v39  ;;  %v771_v42 = vsub.f32 %v1149_v4, %v767_v39  ;;  %v772_v43 = vsub.f32 %v1150_v6, %v767_v39 }
 0x2a1   : > { %v773_v44 = vsub.f32 %v721_v13, %v767_v39  ;;  %v774_v45 = vsub.f32 %v724_v20, %v767_v39  ;;  %v775_v46 = vsub.f32 %v1153_v10, %v767_v39  ;;  %v776_v54 = vsub.f32 %v1154_v17, %v767_v39 }
 0x2a2   : > { %v777_v47 = vmul.f32 1.442695, %v769_v40  ;;  %v779_v48 = vmul.f32 1.442695, %v770_v41  ;;  %v781_v51 = vmul.f32 1.442695, %v771_v42 }
 0x2a3   : > { %v783_v52 = vmul.f32 1.442695, %v772_v43  ;;  %v785_v55 = vmul.f32 1.442695, %v773_v44  ;;  %v787_v56 = vmul.f32 1.442695, %v774_v45 }
 0x2a4   : > { %1245 = vpow2.f32 %v777_v47  ;;  %v789_v57 = vmul.f32 1.442695, %v775_v46  ;;  %v791_v58 = vmul.f32 1.442695, %v776_v54  ;;  %v761_v21 = vmul.f32 1.442695, %v760_v14 }
 0x2a5   : > { %1247 = vpow2.f32 %v779_v48  ;;  %v821_v41 = vld [vmem:[#allocation5 + $0x10] sm:$0xff]  ;;  %v819_v42 = vld [vmem:[#allocation5] sm:$0xff]  ;;  %v822_v43 = vld [vmem:[#allocation5 + $0x18] sm:$0xff] }
 0x2a6   : > { %1249 = vpow2.f32 %v781_v51 }
 0x2a7   : > { %1251 = vpow2.f32 %v783_v52 }
 0x2a8   : > { %1253 = vpow2.f32 %v785_v55 }
 0x2a9   : > { %1255 = vpow2.f32 %v787_v56 }
 0x2aa   : > { %1257 = vpow2.f32 %v789_v57 }
 0x2ab   : > { %1259 = vpow2.f32 %v791_v58 }
 0x2ac   : > { %1261 = vpow2.f32 %v761_v21 }
 0x2ae   : > { %v1246_v59 = vpop.eup %1245 }
 0x2af   : > { %v1248_v60 = vpop.eup %1247  ;;  %v795_v61 = vsel %vm488_vm4, %v1246_v59, 0.0 }
 0x2b0   : > { %v1250_v62 = vpop.eup %1249  ;;  %v796_v63 = vsel %vm488_vm4, %v1248_v60, 0.0  ;;  %v835_v1 = vpack.c.bf16 %v1248_v60, %v1246_v59  ;;  %v923_v60 = vstv %s922_s19 }
 0x2b1   : > { %v1252_v4 = vpop.eup %1251  ;;  %v797_v5 = vadd.f32 %v796_v63, %v795_v61  ;;  %v798_v9 = vsel %vm488_vm4, %v1250_v62, 0.0 }
 0x2b2   : > { %v1254_v6 = vpop.eup %1253  ;;  %1155 = vmatprep.subr.bf16.mxu0 %v835_v1  ;;  %v836_v10 = vpack.c.bf16 %v1252_v4, %v1250_v62  ;;  %v800_v15 = vsel %vm488_vm4, %v1252_v4, 0.0 }
 0x2b3   : > { %v1256_v11 = vpop.eup %1255  ;;  %v799_v12 = vadd.f32 %v798_v9, %v797_v5  ;;  %1156 = vmatpush3.bf16.msra.mxu0 %v835_v1  ;;  %v802_v19 = vsel %vm488_vm4, %v1254_v6, 0.0 }
 0x2b4   : > { %v1258_v13 = vpop.eup %1257  ;;  %1157 = vmatprep.subr.bf16.mxu0 %v836_v10  ;;  %v837_v16 = vpack.c.bf16 %v1256_v11, %v1254_v6  ;;  %v804_v22 = vsel %vm488_vm4, %v1256_v11, 0.0 }
 0x2b5   : > { %v1260_v17 = vpop.eup %1259  ;;  %v801_v18 = vadd.f32 %v800_v15, %v799_v12  ;;  %v806_v24 = vsel %vm488_vm4, %v1258_v13, 0.0 }
 0x2b6   : > { %v838_v0 = vpack.c.bf16 %v1260_v17, %v1258_v13  ;;  %v808_v26 = vsel %vm488_vm4, %v1260_v17, 0.0  ;;  %v1262_v32 = vpop.eup %1261 }
 0x2b7   : > { %v803_v20 = vadd.f32 %v802_v19, %v801_v18  ;;  %1158 = vmatpush3.bf16.msra.mxu0 %v836_v10  ;;  %v794_v35 = vmul.f32 %v1262_v32, %v793_v33  ;;  %v827_v40 = vrot.slane %v1262_v32, %v1748_v37 }
 0x2b8   : > { %1159 = vmatprep.subr.bf16.mxu0 %v837_v16 }
 0x2b9   : > { %v805_v23 = vadd.f32 %v804_v22, %v803_v20  ;;  %v831_v49 = vmul.f32 %v827_v40, %v821_v41  ;;  %v829_v44 = vmul.f32 %v827_v40, %v819_v42  ;;  %v832_v47 = vmul.f32 %v827_v40, %v822_v43 }
 0x2ba   : > { %v830_v52 = vmul.f32 %v827_v40, %v820_v50 }
 0x2bb   : > { %1160 = vmatpush3.bf16.msra.mxu0 %v837_v16  ;;  %v807_v25 = vadd.f32 %v806_v24, %v805_v23 }
 0x2bc   : > { %1161 = vmatprep.subr.bf16.mxu0 %v838_v0 }
 0x2bd   : > { %v809_v27 = vadd.f32 %v808_v26, %v807_v25 }
 0x2bf   : > { %v810_v28 = vrot.slane %v809_v27, 4  ;;  %1162 = vmatpush3.bf16.msra.mxu0 %v838_v0 }
 0x2c1   : > { %v811_v29 = vadd.f32 %v810_v28, %v809_v27 }
 0x2c2   : > { %1164 = vmatmul.mubr.msk.bf16.vlgmr.msra.gmra.mrb[8].mxu0 %vm488_vm4, %v834_v53 }
 0x2c3   : > { %v812_v30 = vrot.slane %v811_v29, 2 }
 0x2c5   : > { %v813_v31 = vadd.f32 %v812_v30, %v811_v29 }
 0x2c7   : > { %v814_v34 = vrot.slane %v813_v31, 1 }
 0x2c9   : > { %v815_v36 = vadd.f32 %v814_v34, %v813_v31 }
 0x2cb   : > { %v816_v38 = vadd.f32 %v815_v36, %v794_v35 }
 0x2cd   : > { %818 = vst.msk [vmem:[#allocation4] sm:$0x1] %vm485_vm6, %v816_v38 }
 0x2d4   : > { %v906_v39 = vld [vmem:[#allocation4] sm:$0x1] }
 0x2d5   : > { %1263 = vrcp.f32 %v906_v39 }
 0x2df   : > { %v1264_v57 = vpop.eup %1263 }
 0x2e0   : > { %v916_v58 = vrot.slane %v1264_v57, %v1748_v37 }
 0x395   : > { %v1165_v53 = vpop.f32.mrb[8].mxu0 }
 0x396   : > { %v896_v45 = vadd.f32 %v1165_v53, %v831_v49  ;;  %v879_v46 = vpop.f32.mrb[9].mxu0 }
 0x397   : > { %v894_v48 = vadd.f32 %v879_v46, %v829_v44  ;;  %v1166_v51 = vpop.f32.mrb[10].mxu0 }
 0x398   : > { %900 = vst.msk [vmem:[#allocation5 + $0x10] sm:$0xff] %vm488_vm4, %v896_v45  ;;  %v897_v54 = vadd.f32 %v1166_v51, %v832_v47  ;;  %v882_v55 = vpop.f32.mrb[11].mxu0 }
 0x399   : > { %898 = vst.msk [vmem:[#allocation5] sm:$0xff] %vm488_vm4, %v894_v48  ;;  %v895_v56 = vadd.f32 %v882_v55, %v830_v52 }
 0x39a   : > { %901 = vst.msk [vmem:[#allocation5 + $0x18] sm:$0xff] %vm488_vm4, %v897_v54 }
 0x39b   : > { %899 = vst.msk [vmem:[#allocation5 + $0x8] sm:$0xff] %vm488_vm4, %v895_v56 }
 0x39f   : > { %v910_v59 = vld [vmem:[#allocation5 + $0x10] sm:$0xff] }
 0x3a0   : > { %v908_v61 = vld [vmem:[#allocation5] sm:$0xff]  ;;  %v920_v62 = vmul.f32 %v916_v58, %v910_v59 }
 0x3a1   : > { %v911_v63 = vld [vmem:[#allocation5 + $0x18] sm:$0xff]  ;;  %v918_v1 = vmul.f32 %v916_v58, %v908_v61 }
 0x3a2   : > { %v909_v4 = vld [vmem:[#allocation5 + $0x8] sm:$0xff]  ;;  %v921_v5 = vmul.f32 %v916_v58, %v911_v63  ;;  %v926_v6 = vmul.f32 %v923_v60, %v920_v62 }
 0x3a3   : > { %v919_v9 = vmul.f32 %v916_v58, %v909_v4  ;;  %v924_v10 = vmul.f32 %v923_v60, %v918_v1 }
 0x3a4   : > { %v927_v11 = vmul.f32 %v923_v60, %v921_v5  ;;  %v934_v12 = vadd.f32 %v926_v6, %v1673_v7 }
 0x3a5   : > { %v925_v37 = vmul.f32 %v923_v60, %v919_v9  ;;  %v932_v13 = vadd.f32 %v924_v10, %v1667_v2 }
 0x3a6   : > { %v935_v14 = vadd.f32 %v927_v11, %v1675_v8  ;;  %938 = vst.msk [vmem:[%s418_s0 + $0x10] sm:$0xff] %vm488_vm4, %v934_v12 }
 0x3a7   : > { %v933_v15 = vadd.f32 %v925_v37, %v1669_v3  ;;  %936 = vst.msk [vmem:[%s418_s0] sm:$0xff] %vm488_vm4, %v932_v13 }
 0x3a8   : > { %939 = vst.msk [vmem:[%s418_s0 + $0x18] sm:$0xff] %vm488_vm4, %v935_v14 }
 0x3a9   : > { %937 = vst.msk [vmem:[%s418_s0 + $0x8] sm:$0xff] %vm488_vm4, %v933_v15 }
 0x3aa   : > { %1338 = shalt.err (!%p1335_p11)
}
 0x3ab   : > { %s1339_s24 = scalar_lea.hbm %s1780_s29, 512  ;;  %s1343_s17 = scalar_lea.hbm %s1844_s9, 1024 }
 0x3ac   : > { %p1340_p1 = scmp.ne.s32.totalorder %s1780_s29, %s1339_s24  ;;  %p1344_p5 = scmp.lt.u32.totalorder %s1780_s29, %s1844_s9 }
 0x3ad   : > { %p1345_p4 = scmp.lt.u32.totalorder %s1343_s17, %s1339_s24  ;;  %p1347_p0 = scmp.lt.u32.totalorder %s1339_s24, %s1780_s29 }
 0x3ae   : > { %p1341_p6 = pnand %p1340_p1, %p1869_p3 }
 0x3af   : > { %p1346_p8 = por %p1345_p4, %p1344_p5 }
 0x3b0   : > { %p1342_p2 = pneg %p1341_p6 }
 0x3b1   : > { %p1348_p12 = por %p1347_p0, %p1346_p8 }
 0x3b3   : > { %p1349_p13 = pnand %p1348_p12, %p1342_p2 }
 0x3b5   : > { %1352 = shalt.err (!%p1349_p13)
}
 0x3b6   : > { %s1422_s0 = smov 128   ;;  %s1423_s22 = smov 8  }
 0x3b7   : > { %1172 = dma.vmem_to_hbm [thread:$0]  (%p1869_p3), %s1782_s13, 512, %s1780_s29, %s941_s14, %s1422_s0, %s1422_s0, %s1423_s22  }
 0x3b8 PF: > { %s970_s26 = sand.u32 1, %s1391_s11   ;;  %p1870_p7 = scmp.ne.s32.totalorder %s1859_s25, 0 }
 0x3b9   : > { %p1871_p10 = scmp.ge.s32.totalorder %s1411_s16, 2  ;;  %s971_s30 = scalar_lea.sflag [#allocation9], %s970_s26 }
 0x3bb   : > { %p1182_p9 = pnand %p1871_p10, %p1870_p7 }
 0x3bd   : > { %1386 = dma.done.wait (!%p1182_p9), %s971_s30, 512  }
 0x3be   : > { %1388 = vsyncadd (!%p1182_p9), %s971_s30, 4294966784  ;;  %s29_s16 = sadd.s32 1, %s1411_s16   ;;  %s1872_s27 = sld [smem:[#allocation16_spill]] }
 0x3bf   : > { %p26_p11 = scmp.ge.s32.totalorder %s29_s16, 4   ;;  %s1873_s13 = sld [smem:[#allocation18_spill]] }
 0x3c0   : > { %s1874_s23 = sld [smem:[#allocation17_spill]]  ;;  %s1875_s11 = smov %s1395_s12 }
 0x3c1   : > { %s1877_s14 = smov %s1407_s15  ;;  %28 = sbr.rel (!%p26_p11) target bundleno = 11 (0xb), region = 122 }
 0x3c4   : > { %s1876_s12 = smov %s1872_s27 }
 0x3c6   : > { %s1878_s15 = smov %s1874_s23 }
 0x3c8   :  { %976 = vsyncpa [#allocation8], 1 }
 0x3c9   :  { %978 = vsyncpa [#allocation8 + $0x1], 1 }
 0x3ca   :  { %979 = vsyncpa [#allocation11], 1 }
 0x3cb   :  { %981 = vsyncpa [#allocation11 + $0x1], 1 }
 0x3cc   :  { %982 = vsyncpa [#allocation9], 1 }
 0x3cd   :  { %984 = vsyncpa [#allocation9 + $0x1], 1 }

</bundles_post_ra>
